<compile_context>
chip_gen: v6e
topology: v6e:2x2x1
jax: 0.10.0
libtpu: 0.0.40
codegen_flags: <defaults>
</compile_context>

<pallas_src>
import functools
import math

import jax
import jax.numpy as jnp
from jax.experimental import pallas as pl
from jax.experimental.pallas import tpu as pltpu


_LANE = 128


def _round_up(x, m):
    return ((x + m - 1) // m) * m


def _cdiv(a, b):
    return (a + b - 1) // b


def policy_net_kernel(x_ref, w1_ref, b1_ref, w2_ref, b2_ref, w3_ref, b3_ref, out_ref,
                      *, chunk, n_chunks):
    # Resident weights/biases: hoisted out of the chunk loop (loaded once per grid step,
    # DMA'd into VMEM only once for the whole grid thanks to the constant index_map).
    w1 = w1_ref[...]
    b1 = b1_ref[...]
    w2 = w2_ref[...]
    b2 = b2_ref[...]
    w3 = w3_ref[...]
    b3 = b3_ref[...]

    def compute_chunk(off):
        # x: (state_dim, chunk) — batch on lanes, fully lane-dense.
        x = x_ref[:, pl.ds(off, chunk)].astype(jnp.float32)
        # DEFAULT precision: f32 dots run as single bf16 MXU passes (intentional).
        h = jnp.dot(w1, x, preferred_element_type=jnp.float32)
        h = jnp.maximum(h + b1, 0.0)
        h = jnp.dot(w2, h, preferred_element_type=jnp.float32)
        h = jnp.maximum(h + b2, 0.0)
        logits = jnp.dot(w3, h, preferred_element_type=jnp.float32) + b3
        # Numerically stable softmax over the action axis (axis 0 here == PyTorch dim=1
        # before the wrapper transpose). Exact division so rows sum to 1 to f32 precision.
        m = jnp.max(logits, axis=0, keepdims=True)
        e = jnp.exp(logits - m)
        p = e / jnp.sum(e, axis=0, keepdims=True)
        out_ref[:, pl.ds(off, chunk)] = p.astype(out_ref.dtype)

    if n_chunks == 1:
        compute_chunk(0)
    else:
        # Short static trip count, fully unrolled: bounds intermediate live ranges per
        # chunk while keeping the whole tile's DMA amortized over one grid step.
        def body(c, carry):
            compute_chunk(pl.multiple_of(c * chunk, chunk))
            return carry

        jax.lax.fori_loop(0, n_chunks, body, 0, unroll=True)


@functools.partial(jax.jit, static_argnames=("tile_b", "chunk_b"))
def policy_net_forward(s, params, tile_b=4096, chunk_b=512):
    """s: [B, state_dim] float32. params: weights [out, in], biases [out, 1] (f32)."""
    B, state_dim = s.shape
    action_dim = params["w3"].shape[0]
    h1_dim = params["w1"].shape[0]
    h2_dim = params["w2"].shape[0]

    # ---- tiling over the batch (lane) axis -------------------------------------------
    B_lane = _round_up(B, _LANE)                       # pad only to lane granularity
    n_tiles = _cdiv(B_lane, max(_LANE, tile_b))
    if n_tiles == 1 and B_lane >= 2 * _LANE:
        n_tiles = 2                                    # keep both v7x TensorCores busy
    tile = _round_up(_cdiv(B_lane, n_tiles), _LANE)    # per-tile lanes, multiple of 128
    B_pad = n_tiles * tile                             # waste < n_tiles * 128 rows
    chunk_req = _round_up(max(chunk_b, _LANE), _LANE)
    chunk = math.gcd(tile, chunk_req)                  # multiple of 128, divides tile
    n_chunks = tile // chunk

    # ---- batch-on-lanes layout + bf16 cast (layout plumbing only) ---------------------
    st = jnp.transpose(s).astype(jnp.bfloat16)         # (state_dim, B)
    if B_pad != B:
        # Zero columns flow through Linear/ReLU/softmax to finite values; sliced off below.
        st = jnp.pad(st, ((0, 0), (0, B_pad - B)))

    kernel = functools.partial(policy_net_kernel, chunk=chunk, n_chunks=n_chunks)

    flops = 2 * B_pad * (state_dim * h1_dim + h1_dim * h2_dim + h2_dim * action_dim)
    bytes_accessed = (B_pad * state_dim * 2 + B_pad * action_dim * 4
                      + 4 * (state_dim * h1_dim + h1_dim * h2_dim + h2_dim * action_dim
                             + h1_dim + h2_dim + action_dim))

    def resident(shape):
        # Same block every grid step -> DMA'd once, stays VMEM-resident.
        return pl.BlockSpec(shape, lambda i: (0, 0))

    out_t = pl.pallas_call(
        kernel,
        out_shape=jax.ShapeDtypeStruct((action_dim, B_pad), jnp.float32),
        grid=(n_tiles,),
        in_specs=[
            pl.BlockSpec((state_dim, tile), lambda i: (0, i)),   # s^T: lane-dense, pipelined
            resident(params["w1"].shape),
            resident(params["b1"].shape),
            resident(params["w2"].shape),
            resident(params["b2"].shape),
            resident(params["w3"].shape),
            resident(params["b3"].shape),
        ],
        out_specs=pl.BlockSpec((action_dim, tile), lambda i: (0, i)),  # lane-dense stores
        compiler_params=pltpu.CompilerParams(
            dimension_semantics=("parallel",),   # independent batch tiles -> megacore on v7x
        ),
        cost_estimate=pl.CostEstimate(
            flops=int(flops),
            transcendentals=int(B_pad * action_dim),
            bytes_accessed=int(bytes_accessed),
        ),
    )(st, params["w1"], params["b1"], params["w2"], params["b2"],
      params["w3"], params["b3"])

    return jnp.transpose(out_t[:, :B])                 # (B, action_dim)


def policy_net_reference(s, params):
    """Pure-JAX reference matching the PyTorch module."""
    h1 = jnp.maximum(s @ params["w1"].T + params["b1"].T, 0.0)
    h2 = jnp.maximum(h1 @ params["w2"].T + params["b2"].T, 0.0)
    logits = h2 @ params["w3"].T + params["b3"].T
    return jax.nn.softmax(logits, axis=1)


def init_params(key, state_dim, hid_shape, action_dim):
    """Deterministic PyTorch-style nn.Linear init. Weights [out, in], biases [out, 1]."""
    dims = [state_dim] + list(hid_shape) + [action_dim]
    params = {}
    for i in range(len(dims) - 1):
        fan_in, fan_out = dims[i], dims[i + 1]
        key, kw, kb = jax.random.split(key, 3)
        bound = 1.0 / (fan_in ** 0.5)
        params[f"w{i+1}"] = jax.random.uniform(
            kw, (fan_out, fan_in), jnp.float32, minval=-bound, maxval=bound)
        params[f"b{i+1}"] = jax.random.uniform(
            kb, (fan_out, 1), jnp.float32, minval=-bound, maxval=bound)
    return params


if __name__ == "__main__":
    # Shapes consistent with the module: state_dim=16, hid_shape=(32, 32), action_dim=8.
    state_dim, hid_shape, action_dim = 16, (32, 32), 8

    key = jax.random.PRNGKey(0)
    key, k_params = jax.random.split(key)
    params = init_params(k_params, state_dim, hid_shape, action_dim)

    # Test 1: tiny batch (single tile, single chunk).
    key, k1 = jax.random.split(key)
    s_small = jax.random.normal(k1, (8, state_dim), jnp.float32)
    p_small = jax.block_until_ready(policy_net_forward(s_small, params))
    r_small = policy_net_reference(s_small, params)
    assert p_small.shape == (8, action_dim)
    assert bool(jnp.all(p_small >= 0.0))
    assert bool(jnp.allclose(jnp.sum(p_small, axis=1), 1.0, atol=1e-4))
    assert bool(jnp.allclose(p_small, r_small, atol=3e-3)), "mismatch vs reference (small)"

    # Test 2: batch not a multiple of 128 -> multi-tile grid + multi-chunk + lane padding.
    key, k2 = jax.random.split(key)
    s_big = jax.random.normal(k2, (520, state_dim), jnp.float32)
    p_big = jax.block_until_ready(policy_net_forward(s_big, params, tile_b=256, chunk_b=128))
    r_big = policy_net_reference(s_big, params)
    assert p_big.shape == (520, action_dim)
    assert bool(jnp.allclose(jnp.sum(p_big, axis=1), 1.0, atol=1e-4))
    assert bool(jnp.allclose(p_big, r_big, atol=3e-3)), "mismatch vs reference (big)"

    print("KERNEL_OK")
</pallas_src>

<mosaic_0001>
module attributes {stable_mosaic.version = 11 : i64} {
  func.func @policy_net_kernel(%arg0: i32, %arg1: memref<16x128xbf16, #tpu.memory_space<vmem>>, %arg2: memref<32x16xf32, #tpu.memory_space<vmem>>, %arg3: memref<32x1xf32, #tpu.memory_space<vmem>>, %arg4: memref<32x32xf32, #tpu.memory_space<vmem>>, %arg5: memref<32x1xf32, #tpu.memory_space<vmem>>, %arg6: memref<8x32xf32, #tpu.memory_space<vmem>>, %arg7: memref<8x1xf32, #tpu.memory_space<vmem>>, %arg8: memref<8x128xf32, #tpu.memory_space<vmem>>) attributes {dimension_semantics = [#tpu.dimension_semantics<parallel>], iteration_bounds = array<i64: 1>, scalar_prefetch = 0 : i64, scratch_operands = 0 : i64, tpu.core_type = #tpu.core_type<tc>, window_params = [{transform_indices = @transform_0, window_bounds = array<i64: 16, 128>}, {pipeline_mode = #tpu.pipeline_mode<synchronous>, transform_indices = @transform_1, window_bounds = array<i64: 32, 16>}, {pipeline_mode = #tpu.pipeline_mode<synchronous>, transform_indices = @transform_2, window_bounds = array<i64: 32, 1>}, {pipeline_mode = #tpu.pipeline_mode<synchronous>, transform_indices = @transform_3, window_bounds = array<i64: 32, 32>}, {pipeline_mode = #tpu.pipeline_mode<synchronous>, transform_indices = @transform_4, window_bounds = array<i64: 32, 1>}, {pipeline_mode = #tpu.pipeline_mode<synchronous>, transform_indices = @transform_5, window_bounds = array<i64: 8, 32>}, {pipeline_mode = #tpu.pipeline_mode<synchronous>, transform_indices = @transform_6, window_bounds = array<i64: 8, 1>}, {transform_indices = @transform_7, window_bounds = array<i64: 8, 128>}]} {
    %c0 = arith.constant 0 : index
    %c0_0 = arith.constant 0 : index
    %0 = vector.load %arg2[%c0, %c0_0] : memref<32x16xf32, #tpu.memory_space<vmem>>, vector<32x16xf32>
    %c0_1 = arith.constant 0 : index
    %c0_2 = arith.constant 0 : index
    %1 = vector.load %arg3[%c0_1, %c0_2] : memref<32x1xf32, #tpu.memory_space<vmem>>, vector<32x1xf32>
    %c0_3 = arith.constant 0 : index
    %c0_4 = arith.constant 0 : index
    %2 = vector.load %arg4[%c0_3, %c0_4] : memref<32x32xf32, #tpu.memory_space<vmem>>, vector<32x32xf32>
    %c0_5 = arith.constant 0 : index
    %c0_6 = arith.constant 0 : index
    %3 = vector.load %arg5[%c0_5, %c0_6] : memref<32x1xf32, #tpu.memory_space<vmem>>, vector<32x1xf32>
    %c0_7 = arith.constant 0 : index
    %c0_8 = arith.constant 0 : index
    %4 = vector.load %arg6[%c0_7, %c0_8] : memref<8x32xf32, #tpu.memory_space<vmem>>, vector<8x32xf32>
    %c0_9 = arith.constant 0 : index
    %c0_10 = arith.constant 0 : index
    %5 = vector.load %arg7[%c0_9, %c0_10] : memref<8x1xf32, #tpu.memory_space<vmem>>, vector<8x1xf32>
    %c0_11 = arith.constant 0 : index
    %c0_12 = arith.constant 0 : index
    %6 = vector.load %arg1[%c0_11, %c0_12] : memref<16x128xbf16, #tpu.memory_space<vmem>>, vector<16x128xbf16>
    %7 = arith.extf %6 : vector<16x128xbf16> to vector<16x128xf32>
    %cst = arith.constant dense<0.000000e+00> : vector<32x128xf32>
    %8 = tpu.matmul %0, %7, %cst {dimension_numbers = #tpu.dot_dimension_numbers<[1], [0], [0], [1], [0, 0, 1, 1], [], []>} : vector<32x16xf32>, vector<16x128xf32>, vector<32x128xf32> -> vector<32x128xf32>
    %9 = vector.broadcast %1 : vector<32x1xf32> to vector<32x128xf32>
    %10 = arith.addf %8, %9 : vector<32x128xf32>
    %cst_13 = arith.constant 0.000000e+00 : f32
    %11 = vector.broadcast %cst_13 : f32 to vector<32x128xf32>
    %12 = arith.maximumf %10, %11 : vector<32x128xf32>
    %cst_14 = arith.constant dense<0.000000e+00> : vector<32x128xf32>
    %13 = tpu.matmul %2, %12, %cst_14 {dimension_numbers = #tpu.dot_dimension_numbers<[1], [0], [0], [1], [0, 0, 1, 1], [], []>} : vector<32x32xf32>, vector<32x128xf32>, vector<32x128xf32> -> vector<32x128xf32>
    %14 = vector.broadcast %3 : vector<32x1xf32> to vector<32x128xf32>
    %15 = arith.addf %13, %14 : vector<32x128xf32>
    %cst_15 = arith.constant 0.000000e+00 : f32
    %16 = vector.broadcast %cst_15 : f32 to vector<32x128xf32>
    %17 = arith.maximumf %15, %16 : vector<32x128xf32>
    %cst_16 = arith.constant dense<0.000000e+00> : vector<8x128xf32>
    %18 = tpu.matmul %4, %17, %cst_16 {dimension_numbers = #tpu.dot_dimension_numbers<[1], [0], [0], [1], [0, 0, 1, 1], [], []>} : vector<8x32xf32>, vector<32x128xf32>, vector<8x128xf32> -> vector<8x128xf32>
    %19 = vector.broadcast %5 : vector<8x1xf32> to vector<8x128xf32>
    %20 = arith.addf %18, %19 : vector<8x128xf32>
    %cst_17 = arith.constant dense<0xFF800000> : vector<128xf32>
    %21 = vector.multi_reduction <maximumf>, %20, %cst_17 [0] : vector<8x128xf32> to vector<128xf32>
    %22 = vector.shape_cast %21 : vector<128xf32> to vector<1x128xf32>
    %23 = vector.broadcast %22 : vector<1x128xf32> to vector<8x128xf32>
    %24 = arith.subf %20, %23 : vector<8x128xf32>
    %25 = math.exp %24 : vector<8x128xf32>
    %cst_18 = arith.constant dense<0.000000e+00> : vector<128xf32>
    %26 = vector.multi_reduction <add>, %25, %cst_18 [0] : vector<8x128xf32> to vector<128xf32>
    %27 = vector.shape_cast %26 : vector<128xf32> to vector<1x128xf32>
    %28 = vector.broadcast %27 : vector<1x128xf32> to vector<8x128xf32>
    %29 = arith.divf %25, %28 : vector<8x128xf32>
    %c0_19 = arith.constant 0 : index
    %c0_20 = arith.constant 0 : index
    %30 = vector.load %arg8[%c0_19, %c0_20] : memref<8x128xf32, #tpu.memory_space<vmem>>, vector<8x128xf32>
    tpu.vector_store %arg8[%c0_19, %c0_20], %29 {strides = array<i32>} : memref<8x128xf32, #tpu.memory_space<vmem>>, vector<8x128xf32>,
    return
  }
  func.func @transform_0(%arg0: i32) -> (i32, i32) {
    %c0_i32 = arith.constant 0 : i32
    %c0_i32_0 = arith.constant 0 : i32
    return %c0_i32, %arg0 : i32, i32
  }
  func.func @transform_1(%arg0: i32) -> (i32, i32) {
    %c0_i32 = arith.constant 0 : i32
    %c0_i32_0 = arith.constant 0 : i32
    %c0_i32_1 = arith.constant 0 : i32
    return %c0_i32, %c0_i32_0 : i32, i32
  }
  func.func @transform_2(%arg0: i32) -> (i32, i32) {
    %c0_i32 = arith.constant 0 : i32
    %c0_i32_0 = arith.constant 0 : i32
    %c0_i32_1 = arith.constant 0 : i32
    return %c0_i32, %c0_i32_0 : i32, i32
  }
  func.func @transform_3(%arg0: i32) -> (i32, i32) {
    %c0_i32 = arith.constant 0 : i32
    %c0_i32_0 = arith.constant 0 : i32
    %c0_i32_1 = arith.constant 0 : i32
    return %c0_i32, %c0_i32_0 : i32, i32
  }
  func.func @transform_4(%arg0: i32) -> (i32, i32) {
    %c0_i32 = arith.constant 0 : i32
    %c0_i32_0 = arith.constant 0 : i32
    %c0_i32_1 = arith.constant 0 : i32
    return %c0_i32, %c0_i32_0 : i32, i32
  }
  func.func @transform_5(%arg0: i32) -> (i32, i32) {
    %c0_i32 = arith.constant 0 : i32
    %c0_i32_0 = arith.constant 0 : i32
    %c0_i32_1 = arith.constant 0 : i32
    return %c0_i32, %c0_i32_0 : i32, i32
  }
  func.func @transform_6(%arg0: i32) -> (i32, i32) {
    %c0_i32 = arith.constant 0 : i32
    %c0_i32_0 = arith.constant 0 : i32
    %c0_i32_1 = arith.constant 0 : i32
    return %c0_i32, %c0_i32_0 : i32, i32
  }
  func.func @transform_7(%arg0: i32) -> (i32, i32) {
    %c0_i32 = arith.constant 0 : i32
    %c0_i32_0 = arith.constant 0 : i32
    return %c0_i32, %arg0 : i32, i32
  }
}

</mosaic_0001>

<bundles_post_ra>
// kernel: policy_net_forward.1
= control target key start
LH: loop header
LB: loop body
LE: loop exit
PB: predicated region body
PF: predicated region fallthrough
CT: control target
= control target key end

     0   :  { %vm68_vm0 = vcmask 130048   ;;  %v468_v2 = vmov 0   ;;  %vm190_vm1 = vcmask 261120   ;;  %v469_v37 = vmov 0.0   ;;  %s580_s0 = inlined_call_operand.vmem [shape: bf16[16,128], index: 0, kind: input, shape index: {}]   ;;  %s581_s1 = inlined_call_operand.vmem [shape: f32[32,16], index: 1, kind: input, shape index: {}]   ;;  %s582_s2 = inlined_call_operand.vmem [shape: f32[32,1], index: 2, kind: input, shape index: {}]   ;;  %s583_s4 = inlined_call_operand.vmem [shape: f32[32,1], index: 4, kind: input, shape index: {}]   ;;  %s584_s6 = inlined_call_operand.vmem [shape: f32[8,1], index: 6, kind: input, shape index: {}]   ;;  %s585_s3 = inlined_call_operand.vmem [shape: f32[32,32], index: 3, kind: input, shape index: {}]   ;;  %s586_s5 = inlined_call_operand.vmem [shape: f32[8,32], index: 5, kind: input, shape index: {}]   ;;  %s587_s7 = inlined_call_operand.vmem [shape: f32[8,128], index: 7, kind: output, shape index: {}]  }
   0x1   :  { %v402_v0 = vld [vmem:[%s580_s0] sm:$0xff]   ;;  %462 = vset.pattern.permute.xlu0 %v468_v2  ;;  %463 = vset.pattern.permute.xlu1 %v468_v2  ;;  %v33_v5 = vld [vmem:[%s582_s2 + $0x18] sm:$0xff]  ;;  %v31_v6 = vld [vmem:[%s582_s2 + $0x8] sm:$0xff]  ;;  %vm470_vm2 = vmmov 0  }
   0x2   :  { %v26_v1 = vld [vmem:[%s581_s1] sm:$0xff]  ;;  %v403_v3 = vunpack.c.l.bf16 %v402_v0  ;;  %v404_v4 = vunpack.c.h.bf16 %v402_v0  ;;  %65 = vperm.xlu0 %462, %v33_v5   ;;  %v32_v7 = vld [vmem:[%s582_s2 + $0x10] sm:$0xff]  ;;  %55 = vperm.xlu1 %463, %v31_v6   ;;  %v27_v8 = vld [vmem:[%s581_s1 + $0x8] sm:$0xff] }
   0x3   :  { %428 = vmatprep.mubr.msk.f32.mxu0 %vm68_vm0, %v26_v1  ;;  %v30_v9 = vld [vmem:[%s582_s2] sm:$0xff]  ;;  %v28_v10 = vld [vmem:[%s581_s1 + $0x10] sm:$0xff]  ;;  %v41_v11 = vld [vmem:[%s583_s4 + $0x18] sm:$0xff] }
   0x4   :  { %424 = vmatprep.subr.mxu0 %v404_v4  ;;  %v29_v12 = vld [vmem:[%s581_s1 + $0x18] sm:$0xff]  ;;  %v40_v13 = vld [vmem:[%s583_s4 + $0x10] sm:$0xff]  ;;  %v39_v14 = vld [vmem:[%s583_s4 + $0x8] sm:$0xff] }
   0x5   :  { %425 = vmatpush3.msra.mxu0 %v404_v4  ;;  %v38_v15 = vld [vmem:[%s583_s4] sm:$0xff]  ;;  %v35_v34 = vld [vmem:[%s585_s3 + $0x8] sm:$0xff]  ;;  %v36_v35 = vld [vmem:[%s585_s3 + $0x10] sm:$0xff] }
   0x6   :  { %426 = vmatprep.subr.mxu0 %v403_v3  ;;  %60 = vperm.xlu0 %462, %v32_v7   ;;  %v43_v16 = vld [vmem:[%s584_s6] sm:$0xff]  ;;  %v37_v36 = vld [vmem:[%s585_s3 + $0x18] sm:$0xff] }
   0x7   :  { %427 = vmatpush3.msra.mxu0 %v403_v3  ;;  %50 = vperm.xlu1 %463, %v30_v9   ;;  %v34_v17 = vld [vmem:[%s585_s3] sm:$0xff] }
   0x8   :  { %429 = vmatmul.mubr.msk.f32.vlgmr.msra.gmra.mxu0 %vm68_vm0, %v27_v8  ;;  %442 = vmatprep.mubr.msk.f32.mxu1 %vm190_vm1, %v34_v17  ;;  %v42_v54 = vld [vmem:[%s586_s5] sm:$0xff] }
   0x9   :  { %431 = vmatprep.mubr.msk.f32.mxu0 %vm68_vm0, %v28_v10  ;;  %448 = vmatprep.subr.mxu0 %v469_v37 }
   0xa   :  { %187 = vperm.xlu0 %462, %v41_v11  }
   0xb   :  { %182 = vperm.xlu1 %463, %v40_v13  }
   0xc   :  { %432 = vmatmul.mubr.msk.f32.gmra.mxu0 %vm68_vm0, %v29_v12 }
   0xd   :  { %456 = vmatprep.mubr.msk.f32.mxu0 %vm470_vm2, %v469_v37 }
   0xe   :  { %177 = vperm.xlu0 %462, %v39_v14  }
   0xf   :  { %172 = vperm.xlu1 %463, %v38_v15  }
  0x12   :  { %294 = vperm.xlu0 %462, %v43_v16  }
  0x7d   :  { %v66_v18 = vpop.permute.xlu0 %65  ;;  %v56_v20 = vpop.permute.xlu1 %55 }
  0x81   :  { %v61_v24 = vpop.permute.xlu0 %60 }
  0x82   :  { %v51_v29 = vpop.permute.xlu1 %50 }
  0x85   :  { %v188_v38 = vpop.permute.xlu0 %187 }
  0x86   :  { %v183_v40 = vpop.permute.xlu1 %182 }
  0x89   :  { %v178_v44 = vpop.permute.xlu0 %177 }
  0x8a   :  { %v173_v49 = vpop.permute.xlu1 %172 }
  0x8d   :  { %v295_v55 = vpop.permute.xlu0 %294 }
  0xc8   :  { %v430_v19 = vpop.f32.mrf.mxu0 }
  0xc9   :  { %v153_v26 = vadd.f32 %v430_v19, %v56_v20 }
  0xca   :  { %v147_v21 = vpop.f32.mrf.mxu0 }
  0xcb   :  { %v148_v30 = vadd.f32 %v147_v21, %v51_v29  ;;  %v167_v32 = vmax.f32 %v153_v26, 0.0 }
  0xcc   :  { %v433_v22 = vpop.f32.mrf.mxu0 }
  0xcd   :  { %v163_v23 = vadd.f32 %v433_v22, %v66_v18  ;;  %v166_v33 = vmax.f32 %v148_v30, 0.0 }
  0xce   :  { %v157_v25 = vpop.f32.mrf.mxu0 }
  0xcf   :  { %v169_v27 = vmax.f32 %v163_v23, 0.0  ;;  %v158_v28 = vadd.f32 %v157_v25, %v61_v24 }
  0xd1   :  { %v168_v31 = vmax.f32 %v158_v28, 0.0  ;;  %434 = vmatprep.subr.mxu1 %v169_v27 }
  0xd2   :  { %435 = vmatpush3.msra.mxu1 %v169_v27 }
  0xd3   :  { %436 = vmatprep.subr.mxu1 %v168_v31 }
  0xd4   :  { %437 = vmatpush3.msra.mxu1 %v168_v31 }
  0xd5   :  { %438 = vmatprep.subr.mxu1 %v167_v32 }
  0xd6   :  { %439 = vmatpush3.msra.mxu1 %v167_v32 }
  0xd7   :  { %440 = vmatprep.subr.mxu1 %v166_v33 }
  0xd8   :  { %441 = vmatpush3.msra.mxu1 %v166_v33 }
  0xd9   :  { %443 = vmatmul.mubr.msk.f32.vlgmr.msra.gmra.mxu1 %vm190_vm1, %v35_v34 }
  0xda   :  { %445 = vmatprep.mubr.msk.f32.mxu1 %vm190_vm1, %v36_v35 }
  0xdd   :  { %446 = vmatmul.mubr.msk.f32.gmra.mxu1 %vm190_vm1, %v37_v36 }
 0x199   :  { %v444_v39 = vpop.f32.mrf.mxu1 }
 0x19a   :  { %v275_v46 = vadd.f32 %v444_v39, %v178_v44 }
 0x19b   :  { %v269_v41 = vpop.f32.mrf.mxu1 }
 0x19c   :  { %v270_v50 = vadd.f32 %v269_v41, %v173_v49  ;;  %v289_v52 = vmax.f32 %v275_v46, 0.0 }
 0x19d   :  { %v447_v42 = vpop.f32.mrf.mxu1 }
 0x19e   :  { %v285_v43 = vadd.f32 %v447_v42, %v188_v38  ;;  %v288_v53 = vmax.f32 %v270_v50, 0.0 }
 0x19f   :  { %v279_v45 = vpop.f32.mrf.mxu1 }
 0x1a0   :  { %v291_v47 = vmax.f32 %v285_v43, 0.0  ;;  %v280_v48 = vadd.f32 %v279_v45, %v183_v40 }
 0x1a2   :  { %v290_v51 = vmax.f32 %v280_v48, 0.0  ;;  %449 = vmatpush3.msra.mxu0 %v291_v47 }
 0x1a3   :  { %450 = vmatprep.subr.mxu0 %v469_v37 }
 0x1a4   :  { %451 = vmatpush3.msra.mxu0 %v290_v51 }
 0x1a5   :  { %452 = vmatprep.subr.mxu0 %v469_v37 }
 0x1a6   :  { %453 = vmatpush3.msra.mxu0 %v289_v52 }
 0x1a7   :  { %454 = vmatprep.subr.mxu0 %v469_v37 }
 0x1a8   :  { %455 = vmatpush3.msra.mxu0 %v288_v53 }
 0x1a9   :  { %457 = vmatmul.mubr.msk.f32.vlgmr.msra.gmra.mxu0 %vm190_vm1, %v42_v54 }
 0x269   :  { %v366_v56 = vpop.f32.mrf.mxu0 }
 0x26a   :  { %v367_v57 = vadd.f32 %v366_v56, %v295_v55 }
 0x26b   :  { %v458_v58 = vpop.f32.mrf.mxu0 }
 0x26c   :  { %v370_v59 = vrot.slane %v367_v57, 4 }
 0x26e   :  { %v371_v60 = vmax.f32 %v367_v57, %v370_v59 }
 0x270   :  { %v372_v61 = vrot.slane %v371_v60, 2 }
 0x272   :  { %v373_v62 = vmax.f32 %v371_v60, %v372_v61 }
 0x274   :  { %v374_v63 = vrot.slane %v373_v62, 1 }
 0x276   :  { %v375_v0 = vmax.f32 %v373_v62, %v374_v63 }
 0x278   :  { %v376_v1 = vsub.f32 %v367_v57, %v375_v0 }
 0x27a   :  { %v377_v2 = vmul.f32 1.442695, %v376_v1 }
 0x27c   :  { %464 = vpow2.f32 %v377_v2 }
 0x289   :  { %v465_v3 = vpop.eup %464 }
 0x28a   :  { %v379_v4 = vrot.slane %v465_v3, 4 }
 0x28c   :  { %v380_v5 = vadd.f32 %v465_v3, %v379_v4 }
 0x28e   :  { %v381_v6 = vrot.slane %v380_v5, 2 }
 0x290   :  { %v382_v7 = vadd.f32 %v381_v6, %v380_v5 }
 0x292   :  { %v383_v8 = vrot.slane %v382_v7, 1 }
 0x294   :  { %v384_v9 = vadd.f32 %v383_v8, %v382_v7 }
 0x296   :  { %466 = vrcp.f32 %v384_v9 }
 0x2a3   :  { %v467_v10 = vpop.eup %466 }
 0x2a4   :  { %v386_v11 = vmul.f32 %v467_v10, %v465_v3 }
 0x2a6   :  { %387 = vst [vmem:[%s587_s7] sm:$0xff] %v386_v11 }

</bundles_post_ra>
